<compile_context>
chip_gen: v7x
topology: tpu7x:2x2x1
jax: 0.10.0
libtpu: 0.0.40
codegen_flags: <defaults>
</compile_context>

<pallas_src>
import functools

import jax
import jax.numpy as jnp
from jax import lax
from jax.experimental import pallas as pl
from jax.experimental.pallas import tpu as pltpu


# Set False to use torch-exact erf GELU (slower: long f32 polynomial on VALU).
GELU_TANH_APPROX = True


def _round_up(n, m):
    return ((n + m - 1) // m) * m


@functools.lru_cache(maxsize=None)
def _vmem_capacity_bytes():
    """Per-core VMEM capacity; conservative 64 MiB (v7x) if the query fails."""
    try:
        info = pltpu.get_tpu_info()
        cap = int(getattr(info, "vmem_capacity_bytes", 0))
        if cap > 0:
            return cap
    except Exception:
        pass
    return 64 * 1024 * 1024


def _maybe_single_buffered(block_shape, index_map, single_buffer):
    """BlockSpec; request 1-deep pipelining for large grid-invariant blocks."""
    if single_buffer:
        try:
            return pl.BlockSpec(block_shape, index_map,
                                pipeline_mode=pl.Buffered(1))
        except Exception:
            pass
    return pl.BlockSpec(block_shape, index_map)


def _heads_per_group(heads, dh):
    """Heads per attention grid step so each slab is a multiple of 128 lanes."""
    inner = heads * dh
    if inner % 128 != 0 or inner <= 128:
        return heads                       # tiny dims: single full-width group
    hg = -(-128 // dh)                     # ceil(128 / dh)
    while hg < heads and (heads % hg != 0 or (hg * dh) % 128 != 0):
        hg += 1
    if heads % hg != 0 or (hg * dh) % 128 != 0:
        return heads
    return hg


# ----------------------------------------------------------------------------
# Kernel 1: fused [LayerNorm] -> matmul (bf16 MXU, f32 acc) -> [+bias]
#           -> [GELU] -> [+residual].
# x:(M,K), gamma/beta:(1,K), w:(K,N) bf16, bias:(1,N), res:(M,N) -> out:(M,N)
# Preferred layout: tn == N (weight resident in VMEM), 1-D grid over M tiles so
# the activation tile is loaded / LayerNorm'd exactly once.
# ----------------------------------------------------------------------------
def _fused_linear_kernel(x_ref, *rest, has_ln, has_bias, has_res, activation,
                         gelu_tanh):
    i = 0
    if has_ln:
        g_ref, b_ref = rest[i], rest[i + 1]
        i += 2
    w_ref = rest[i]
    i += 1
    bias_ref = None
    if has_bias:
        bias_ref = rest[i]
        i += 1
    res_ref = None
    if has_res:
        res_ref = rest[i]
        i += 1
    o_ref = rest[i]

    if has_ln:
        x = x_ref[...].astype(jnp.float32)
        mu = jnp.mean(x, axis=-1, keepdims=True)
        var = jnp.mean(jnp.square(x - mu), axis=-1, keepdims=True)
        x = (x - mu) * lax.rsqrt(var + 1e-5)          # torch LayerNorm eps=1e-5
        x = x * g_ref[...] + b_ref[...]
        xb = x.astype(jnp.bfloat16)
    else:
        xb = x_ref[...].astype(jnp.bfloat16)

    y = jnp.dot(xb, w_ref[...], preferred_element_type=jnp.float32)
    if has_bias:
        y = y + bias_ref[...]
    if activation == "gelu":
        if gelu_tanh:
            # tanh-approx GELU: tanh goes to the (otherwise idle) EUP slot.
            c = 0.7978845608028654                     # sqrt(2/pi)
            y = 0.5 * y * (1.0 + jnp.tanh(c * (y + 0.044715 * y * y * y)))
        else:
            y = 0.5 * y * (1.0 + lax.erf(y * (2.0 ** -0.5)))  # exact (torch)
    if has_res:
        y = y + res_ref[...].astype(jnp.float32)
    o_ref[...] = y.astype(o_ref.dtype)


def fused_linear(x, w, *, gamma=None, beta=None, bias=None, residual=None,
                 activation=None, out_dtype=jnp.float32):
    M, K = x.shape
    Kw, N = w.shape
    assert Kw == K

    has_ln = gamma is not None
    has_bias = bias is not None
    has_res = residual is not None

    cap = _vmem_capacity_bytes()
    # Generation-gated row tile: v5e/v6e (128 MiB VMEM) can afford bigger tiles
    # than v7x (64 MiB per TC).
    tm_max = 512 if cap >= (100 << 20) else 256
    tm = M if M <= tm_max else tm_max

    x_it = jnp.dtype(x.dtype).itemsize
    w_it = jnp.dtype(w.dtype).itemsize
    o_it = jnp.dtype(out_dtype).itemsize
    r_it = jnp.dtype(residual.dtype).itemsize if has_res else 0

    def footprint(tn_, w_bufs):
        b = 2 * tm * K * x_it                          # x, double-buffered
        b += w_bufs * K * tn_ * w_it                   # weight
        b += 2 * tm * tn_ * o_it                       # output
        if has_bias:
            b += 2 * 8 * tn_ * 4
        if has_res:
            b += 2 * tm * tn_ * r_it
        if has_ln:
            b += 4 * 8 * K * 4
        return b

    budget = int(cap * 0.7)
    if N <= 512 or footprint(N, 1) <= budget:
        tn = N                                         # weight fully resident
    else:
        tn = 512
        while tn > 128 and footprint(tn, 2) > budget:
            tn //= 2

    weight_resident = (tn == N)
    # Single-buffer the weight only when it is grid-invariant AND big enough
    # for the second pipeline buffer to matter (>= 2 MiB).
    single_buf_w = weight_resident and (K * tn * w_it >= (1 << 21))
    est = footprint(tn, 1 if single_buf_w else 2)
    vmem_limit = int(min(cap * 0.9, max(est * 3 // 2, 32 << 20)))

    inputs = [x]
    if weight_resident:
        grid = (pl.cdiv(M, tm),)
        dims = ("parallel",)
        x_spec = pl.BlockSpec((tm, K), lambda i: (i, 0))
        ln_spec = pl.BlockSpec((1, K), lambda i: (0, 0))
        w_spec = _maybe_single_buffered((K, tn), lambda i: (0, 0), single_buf_w)
        b_spec = pl.BlockSpec((1, tn), lambda i: (0, 0))
        r_spec = pl.BlockSpec((tm, tn), lambda i: (i, 0))
        o_spec = pl.BlockSpec((tm, tn), lambda i: (i, 0))
    else:
        # Fallback for weights too large for VMEM: N tiles outer so the weight
        # block index is independent of the M axis.
        grid = (pl.cdiv(N, tn), pl.cdiv(M, tm))
        dims = ("parallel", "parallel")
        x_spec = pl.BlockSpec((tm, K), lambda j, i: (i, 0))
        ln_spec = pl.BlockSpec((1, K), lambda j, i: (0, 0))
        w_spec = pl.BlockSpec((K, tn), lambda j, i: (0, j))
        b_spec = pl.BlockSpec((1, tn), lambda j, i: (0, j))
        r_spec = pl.BlockSpec((tm, tn), lambda j, i: (i, j))
        o_spec = pl.BlockSpec((tm, tn), lambda j, i: (i, j))

    in_specs = [x_spec]
    if has_ln:
        inputs += [gamma.reshape(1, K).astype(jnp.float32),
                   beta.reshape(1, K).astype(jnp.float32)]
        in_specs += [ln_spec, ln_spec]
    inputs.append(w)
    in_specs.append(w_spec)
    if has_bias:
        inputs.append(bias.reshape(1, N).astype(jnp.float32))
        in_specs.append(b_spec)
    if has_res:
        inputs.append(residual)
        in_specs.append(r_spec)

    kernel = functools.partial(_fused_linear_kernel, has_ln=has_ln,
                               has_bias=has_bias, has_res=has_res,
                               activation=activation,
                               gelu_tanh=GELU_TANH_APPROX)
    return pl.pallas_call(
        kernel,
        out_shape=jax.ShapeDtypeStruct((M, N), out_dtype),
        grid=grid,
        in_specs=in_specs,
        out_specs=o_spec,
        compiler_params=pltpu.CompilerParams(
            dimension_semantics=dims,
            vmem_limit_bytes=vmem_limit),
    )(*inputs)


# ----------------------------------------------------------------------------
# Kernel 2: multi-head self-attention.  Grid is (batch tiles, head groups);
# the qkv projection's columns are laid out per head-group ([q_g | k_g | v_g]),
# so each grid step reads one 128-lane-aligned slab (BlockSpec slice, no
# in-kernel lane shuffles for the slab itself), and the per-group output is a
# single 128-lane-wide store.  The attention scale is pre-folded into w_qkv.
# qkv:(B, S, 3*inner) bf16 -> out:(B, S, inner) bf16
# ----------------------------------------------------------------------------
def _attention_kernel(qkv_ref, o_ref, *, hg, dh, bt):
    gw = hg * dh
    for bb in range(bt):                               # static unroll (batch)
        qkv = qkv_ref[bb]                              # (S, 3*gw) bf16
        outs = []
        for h in range(hg):                            # static unroll (heads)
            q = qkv[:, h * dh:(h + 1) * dh]            # already scaled via w_qkv
            k = qkv[:, gw + h * dh: gw + (h + 1) * dh]
            v = qkv[:, 2 * gw + h * dh: 2 * gw + (h + 1) * dh]
            s = lax.dot_general(q, k, (((1,), (1,)), ((), ())),
                                preferred_element_type=jnp.float32)   # (S, S)
            m = jnp.max(s, axis=-1, keepdims=True)
            p = jnp.exp(s - m)                         # softmax kept in f32
            l = jnp.sum(p, axis=-1, keepdims=True)
            p = p * pl.reciprocal(l, approx=True)      # EUP, not VALU divide
            outs.append(jnp.dot(p.astype(jnp.bfloat16), v,
                                preferred_element_type=jnp.float32))
        o = outs[0] if hg == 1 else jnp.concatenate(outs, axis=-1)
        o_ref[bb] = o.astype(o_ref.dtype)


def attention(qkv, heads, dh, hg):
    B, S, three_inner = qkv.shape
    inner = heads * dh
    gw = hg * dh
    ng = heads // hg
    bt = 1
    for cand in (4, 2, 1):                             # batch elems per step
        if B % cand == 0:
            bt = cand
            break
    kernel = functools.partial(_attention_kernel, hg=hg, dh=dh, bt=bt)
    return pl.pallas_call(
        kernel,
        out_shape=jax.ShapeDtypeStruct((B, S, inner), jnp.bfloat16),
        grid=(B // bt, ng),
        in_specs=[pl.BlockSpec((bt, S, 3 * gw), lambda b, g: (b, 0, g))],
        out_specs=pl.BlockSpec((bt, S, gw), lambda b, g: (b, 0, g)),
        compiler_params=pltpu.CompilerParams(
            dimension_semantics=("parallel", "parallel")),
    )(qkv)


# ----------------------------------------------------------------------------
# Kernel 3: the entire patch embedding in one pass:
#   LN(patch_dim) -> Linear(patch_dim, D) -> LN(D) -> + positional embedding.
# x:(B, Np, patch_dim), pos:(Np, D) -> (B, Np, D) f32
# ----------------------------------------------------------------------------
def _patch_embed_kernel(x_ref, g1_ref, b1_ref, w_ref, bias_ref, g2_ref, b2_ref,
                        pos_ref, o_ref):
    x = x_ref[0].astype(jnp.float32)                   # (Np, patch_dim)
    mu = jnp.mean(x, axis=-1, keepdims=True)
    var = jnp.mean(jnp.square(x - mu), axis=-1, keepdims=True)
    x = (x - mu) * lax.rsqrt(var + 1e-5)
    x = x * g1_ref[...] + b1_ref[...]
    y = jnp.dot(x.astype(jnp.bfloat16), w_ref[...],
                preferred_element_type=jnp.float32)
    y = y + bias_ref[...]
    mu2 = jnp.mean(y, axis=-1, keepdims=True)
    var2 = jnp.mean(jnp.square(y - mu2), axis=-1, keepdims=True)
    y = (y - mu2) * lax.rsqrt(var2 + 1e-5)
    o_ref[0] = (y * g2_ref[...] + b2_ref[...] + pos_ref[...]).astype(o_ref.dtype)


def patch_embed(tokens, g1, b1, w, bias, g2, b2, pos):
    B, Np, Pd = tokens.shape
    D = w.shape[1]
    cap = _vmem_capacity_bytes()
    return pl.pallas_call(
        _patch_embed_kernel,
        out_shape=jax.ShapeDtypeStruct((B, Np, D), jnp.float32),
        grid=(B,),
        in_specs=[pl.BlockSpec((1, Np, Pd), lambda b: (b, 0, 0)),
                  pl.BlockSpec((1, Pd), lambda b: (0, 0)),
                  pl.BlockSpec((1, Pd), lambda b: (0, 0)),
                  pl.BlockSpec((Pd, D), lambda b: (0, 0)),
                  pl.BlockSpec((1, D), lambda b: (0, 0)),
                  pl.BlockSpec((1, D), lambda b: (0, 0)),
                  pl.BlockSpec((1, D), lambda b: (0, 0)),
                  pl.BlockSpec((Np, D), lambda b: (0, 0))],
        out_specs=pl.BlockSpec((1, Np, D), lambda b: (b, 0, 0)),
        compiler_params=pltpu.CompilerParams(
            dimension_semantics=("parallel",),
            vmem_limit_bytes=int(min(cap * 0.9, 48 << 20))),
    )(tokens, g1.reshape(1, Pd).astype(jnp.float32),
      b1.reshape(1, Pd).astype(jnp.float32), w,
      bias.reshape(1, D).astype(jnp.float32),
      g2.reshape(1, D).astype(jnp.float32),
      b2.reshape(1, D).astype(jnp.float32), pos)


# ----------------------------------------------------------------------------
# Parameter init (deterministic, synthetic).  Linear weights stored (in, out)
# in bfloat16 (MXU inputs); LN params / biases / embeddings in f32.
#   * w_qkv: attention scale dh**-0.5 folded into the Q columns; columns laid
#     out per head-group as [q_g | k_g | v_g] (a column permutation of the
#     torch [Q|K|V] layout — apply the same permutation when importing
#     checkpoints).
#   * Classifier head padded to a lane-dense multiple of 128 columns.
# ----------------------------------------------------------------------------
def init_params(key, cfg):
    C = cfg["channels"]
    p = cfg["patch_size"]
    D = cfg["dim"]
    heads, dh = cfg["heads"], cfg["dim_head"]
    inner = heads * dh
    hg = _heads_per_group(heads, dh)
    gw = hg * dh
    mlp = cfg["mlp_dim"]
    ncls = cfg["num_classes"]
    ncls_pad = _round_up(ncls, 128)
    npatch = (cfg["image_size"] // p) ** 2
    patch_dim = C * p * p
    scale = dh ** -0.5

    keys = iter(jax.random.split(key, 16 + 8 * cfg["depth"]))

    def wmat(shape, dtype=jnp.bfloat16):
        return (0.02 * jax.random.normal(next(keys), shape,
                                         dtype=jnp.float32)).astype(dtype)

    head_w = jnp.zeros((D, ncls_pad), jnp.float32)
    head_w = head_w.at[:, :ncls].set(
        0.02 * jax.random.normal(next(keys), (D, ncls), dtype=jnp.float32))

    params = {
        "patch_ln1_g": jnp.ones((patch_dim,), jnp.float32),
        "patch_ln1_b": jnp.zeros((patch_dim,), jnp.float32),
        "patch_w": wmat((patch_dim, D)),
        "patch_b": jnp.zeros((D,), jnp.float32),
        "patch_ln2_g": jnp.ones((D,), jnp.float32),
        "patch_ln2_b": jnp.zeros((D,), jnp.float32),
        "cls_token": wmat((1, 1, D), dtype=jnp.float32),
        "pos_emb": wmat((1, npatch + 1, D), dtype=jnp.float32),
        "final_ln_g": jnp.ones((D,), jnp.float32),
        "final_ln_b": jnp.zeros((D,), jnp.float32),
        "head_w": head_w.astype(jnp.bfloat16),
        "head_b": jnp.zeros((ncls_pad,), jnp.float32),
        "layers": [],
    }
    for _ in range(cfg["depth"]):
        wq = 0.02 * jax.random.normal(next(keys), (D, inner), jnp.float32)
        wk = 0.02 * jax.random.normal(next(keys), (D, inner), jnp.float32)
        wv = 0.02 * jax.random.normal(next(keys), (D, inner), jnp.float32)
        wq = wq * scale                                # fold attention scale
        parts = []
        for g in range(heads // hg):                   # group-major layout
            sl = slice(g * gw, (g + 1) * gw)
            parts += [wq[:, sl], wk[:, sl], wv[:, sl]]
        w_qkv = jnp.concatenate(parts, axis=1).astype(jnp.bfloat16)

        params["layers"].append({
            "attn_ln_g": jnp.ones((D,), jnp.float32),
            "attn_ln_b": jnp.zeros((D,), jnp.float32),
            "w_qkv": w_qkv,                            # no bias (matches to_qkv)
            "w_o": wmat((inner, D)),
            "b_o": jnp.zeros((D,), jnp.float32),
            "ff_ln_g": jnp.ones((D,), jnp.float32),
            "ff_ln_b": jnp.zeros((D,), jnp.float32),
            "w1": wmat((D, mlp)),
            "b1": jnp.zeros((mlp,), jnp.float32),
            "w2": wmat((mlp, D)),
            "b2": jnp.zeros((D,), jnp.float32),
        })
    return params


# ----------------------------------------------------------------------------
# Forward pass (reshape glue in JAX, all compute in the Pallas kernels above).
# ----------------------------------------------------------------------------
def patchify(x, patch_size):
    # 'b c (h p1) (w p2) -> b (h w) (p1 p2 c)'  (lucidrains ViT ordering)
    B, C, H, W = x.shape
    p = patch_size
    x = x.reshape(B, C, H // p, p, W // p, p)
    x = x.transpose(0, 2, 4, 3, 5, 1)                  # b h w p1 p2 c
    return x.reshape(B, (H // p) * (W // p), p * p * C)


def vit_forward(params, x, cfg):
    B = x.shape[0]
    D = cfg["dim"]
    heads, dh = cfg["heads"], cfg["dim_head"]
    inner = heads * dh
    hg = _heads_per_group(heads, dh)
    ncls = cfg["num_classes"]

    # ---- patch embedding: Rearrange -> LN -> Linear -> LN (+ pos emb) ----
    tokens = patchify(x, cfg["patch_size"])            # (B, Np, patch_dim)
    Np = tokens.shape[1]
    S = Np + 1
    pos_patch = params["pos_emb"][0, 1:S]               # (Np, D)
    emb = patch_embed(tokens, params["patch_ln1_g"], params["patch_ln1_b"],
                      params["patch_w"], params["patch_b"],
                      params["patch_ln2_g"], params["patch_ln2_b"], pos_patch)

    # ---- cls token (+ its pos emb), concat; emb dropout = identity ----
    cls = params["cls_token"][0] + params["pos_emb"][0, 0:1]   # (1, D)
    cls = jnp.broadcast_to(cls[None], (B, 1, D))
    h = jnp.concatenate([cls, emb], axis=1).reshape(B * S, D)   # (B*S, D) f32

    # ---- transformer encoder ----
    for lp in params["layers"]:
        # attention block: LN -> qkv (no bias, pre-scaled Q) -> MHA
        #                  -> proj(+bias) -> +residual
        qkv = fused_linear(h, lp["w_qkv"],
                           gamma=lp["attn_ln_g"], beta=lp["attn_ln_b"],
                           out_dtype=jnp.bfloat16)      # (B*S, 3*inner) bf16
        attn_out = attention(qkv.reshape(B, S, 3 * inner), heads, dh, hg)
        h = fused_linear(attn_out.reshape(B * S, inner), lp["w_o"],
                         bias=lp["b_o"], residual=h)    # (B*S, D) f32

        # feed-forward block: LN -> Linear+GELU -> Linear -> +residual
        ff = fused_linear(h, lp["w1"],
                          gamma=lp["ff_ln_g"], beta=lp["ff_ln_b"],
                          bias=lp["b1"], activation="gelu",
                          out_dtype=jnp.bfloat16)       # (B*S, mlp) bf16
        h = fused_linear(ff, lp["w2"], bias=lp["b2"], residual=h)

    # ---- final LayerNorm fused into the classification head ----
    # (LN is per-row, so LN-then-pool == pool-then-LN on the cls rows; valid
    #  for pool='cls' which is what the module uses.)
    cls_rows = h.reshape(B, S, D)[:, 0]                 # (B, D)
    logits_pad = fused_linear(cls_rows, params["head_w"],
                              gamma=params["final_ln_g"],
                              beta=params["final_ln_b"],
                              bias=params["head_b"])    # (B, 128) lane-dense
    return logits_pad[:, :ncls]


if __name__ == "__main__":
    cfg = dict(image_size=16, patch_size=8, channels=3, dim=32, depth=2,
               heads=4, dim_head=8, mlp_dim=64, num_classes=10)
    key = jax.random.PRNGKey(0)
    kp, kx = jax.random.split(key)
    params = init_params(kp, cfg)
    # NCHW input, like the PyTorch module.
    x = jax.random.normal(kx, (2, cfg["channels"], cfg["image_size"],
                               cfg["image_size"]), dtype=jnp.float32)
    logits = vit_forward(params, x, cfg)
    jax.block_until_ready(logits)
    assert logits.shape == (2, cfg["num_classes"]), logits.shape
    assert jnp.all(jnp.isfinite(logits))
    print("KERNEL_OK")
</pallas_src>

<mosaic_0001>
module attributes {stable_mosaic.version = 11 : i64} {
  func.func @_patch_embed_kernel(%arg0: i32, %arg1: memref<1x4x192xf32, #tpu.memory_space<vmem>>, %arg2: memref<1x192xf32, #tpu.memory_space<vmem>>, %arg3: memref<1x192xf32, #tpu.memory_space<vmem>>, %arg4: memref<192x32xbf16, #tpu.memory_space<vmem>>, %arg5: memref<1x32xf32, #tpu.memory_space<vmem>>, %arg6: memref<1x32xf32, #tpu.memory_space<vmem>>, %arg7: memref<1x32xf32, #tpu.memory_space<vmem>>, %arg8: memref<4x32xf32, #tpu.memory_space<vmem>>, %arg9: memref<1x4x32xf32, #tpu.memory_space<vmem>>) attributes {dimension_semantics = [#tpu.dimension_semantics<parallel>], iteration_bounds = array<i64: 2>, scalar_prefetch = 0 : i64, scratch_operands = 0 : i64, tpu.core_type = #tpu.core_type<tc>, window_params = [{transform_indices = @transform_0, window_bounds = array<i64: 1, 4, 192>}, {pipeline_mode = #tpu.pipeline_mode<synchronous>, transform_indices = @transform_1, window_bounds = array<i64: 1, 192>}, {pipeline_mode = #tpu.pipeline_mode<synchronous>, transform_indices = @transform_2, window_bounds = array<i64: 1, 192>}, {pipeline_mode = #tpu.pipeline_mode<synchronous>, transform_indices = @transform_3, window_bounds = array<i64: 192, 32>}, {pipeline_mode = #tpu.pipeline_mode<synchronous>, transform_indices = @transform_4, window_bounds = array<i64: 1, 32>}, {pipeline_mode = #tpu.pipeline_mode<synchronous>, transform_indices = @transform_5, window_bounds = array<i64: 1, 32>}, {pipeline_mode = #tpu.pipeline_mode<synchronous>, transform_indices = @transform_6, window_bounds = array<i64: 1, 32>}, {pipeline_mode = #tpu.pipeline_mode<synchronous>, transform_indices = @transform_7, window_bounds = array<i64: 4, 32>}, {transform_indices = @transform_8, window_bounds = array<i64: 1, 4, 32>}]} {
    %c0 = arith.constant 0 : index
    %c0_0 = arith.constant 0 : index
    %c0_1 = arith.constant 0 : index
    %0 = vector.load %arg1[%c0, %c0_0, %c0_1] : memref<1x4x192xf32, #tpu.memory_space<vmem>>, vector<1x4x192xf32>
    %1 = vector.shape_cast %0 : vector<1x4x192xf32> to vector<4x192xf32>
    %cst = arith.constant dense<0.000000e+00> : vector<4xf32>
    %2 = vector.multi_reduction <add>, %1, %cst [1] : vector<4x192xf32> to vector<4xf32>
    %3 = vector.shape_cast %2 : vector<4xf32> to vector<4x1xf32>
    %cst_2 = arith.constant 1.920000e+02 : f32
    %4 = vector.broadcast %cst_2 : f32 to vector<4x1xf32>
    %5 = arith.divf %3, %4 : vector<4x1xf32>
    %6 = vector.broadcast %5 : vector<4x1xf32> to vector<4x192xf32>
    %7 = arith.subf %1, %6 : vector<4x192xf32>
    %8 = arith.mulf %7, %7 : vector<4x192xf32>
    %cst_3 = arith.constant dense<0.000000e+00> : vector<4xf32>
    %9 = vector.multi_reduction <add>, %8, %cst_3 [1] : vector<4x192xf32> to vector<4xf32>
    %10 = vector.shape_cast %9 : vector<4xf32> to vector<4x1xf32>
    %cst_4 = arith.constant 1.920000e+02 : f32
    %11 = vector.broadcast %cst_4 : f32 to vector<4x1xf32>
    %12 = arith.divf %10, %11 : vector<4x1xf32>
    %13 = vector.broadcast %5 : vector<4x1xf32> to vector<4x192xf32>
    %14 = arith.subf %1, %13 : vector<4x192xf32>
    %cst_5 = arith.constant 9.99999974E-6 : f32
    %15 = vector.broadcast %cst_5 : f32 to vector<4x1xf32>
    %16 = arith.addf %12, %15 : vector<4x1xf32>
    %17 = math.rsqrt %16 : vector<4x1xf32>
    %18 = vector.broadcast %17 : vector<4x1xf32> to vector<4x192xf32>
    %19 = arith.mulf %14, %18 : vector<4x192xf32>
    %c0_6 = arith.constant 0 : index
    %c0_7 = arith.constant 0 : index
    %20 = vector.load %arg2[%c0_6, %c0_7] : memref<1x192xf32, #tpu.memory_space<vmem>>, vector<1x192xf32>
    %21 = vector.broadcast %20 : vector<1x192xf32> to vector<4x192xf32>
    %22 = arith.mulf %19, %21 : vector<4x192xf32>
    %c0_8 = arith.constant 0 : index
    %c0_9 = arith.constant 0 : index
    %23 = vector.load %arg3[%c0_8, %c0_9] : memref<1x192xf32, #tpu.memory_space<vmem>>, vector<1x192xf32>
    %24 = vector.broadcast %23 : vector<1x192xf32> to vector<4x192xf32>
    %25 = arith.addf %22, %24 : vector<4x192xf32>
    %26 = arith.truncf %25 : vector<4x192xf32> to vector<4x192xbf16>
    %c0_10 = arith.constant 0 : index
    %c0_11 = arith.constant 0 : index
    %27 = vector.load %arg4[%c0_10, %c0_11] : memref<192x32xbf16, #tpu.memory_space<vmem>>, vector<192x32xbf16>
    %cst_12 = arith.constant dense<0.000000e+00> : vector<4x32xf32>
    %28 = tpu.matmul %26, %27, %cst_12 {dimension_numbers = #tpu.dot_dimension_numbers<[1], [0], [0], [1], [0, 0, 1, 1], [], []>} : vector<4x192xbf16>, vector<192x32xbf16>, vector<4x32xf32> -> vector<4x32xf32>
    %c0_13 = arith.constant 0 : index
    %c0_14 = arith.constant 0 : index
    %29 = vector.load %arg5[%c0_13, %c0_14] : memref<1x32xf32, #tpu.memory_space<vmem>>, vector<1x32xf32>
    %30 = vector.broadcast %29 : vector<1x32xf32> to vector<4x32xf32>
    %31 = arith.addf %28, %30 : vector<4x32xf32>
    %cst_15 = arith.constant dense<0.000000e+00> : vector<4xf32>
    %32 = vector.multi_reduction <add>, %31, %cst_15 [1] : vector<4x32xf32> to vector<4xf32>
    %33 = vector.shape_cast %32 : vector<4xf32> to vector<4x1xf32>
    %cst_16 = arith.constant 3.200000e+01 : f32
    %34 = vector.broadcast %cst_16 : f32 to vector<4x1xf32>
    %35 = arith.divf %33, %34 : vector<4x1xf32>
    %36 = vector.broadcast %35 : vector<4x1xf32> to vector<4x32xf32>
    %37 = arith.subf %31, %36 : vector<4x32xf32>
    %38 = arith.mulf %37, %37 : vector<4x32xf32>
    %cst_17 = arith.constant dense<0.000000e+00> : vector<4xf32>
    %39 = vector.multi_reduction <add>, %38, %cst_17 [1] : vector<4x32xf32> to vector<4xf32>
    %40 = vector.shape_cast %39 : vector<4xf32> to vector<4x1xf32>
    %cst_18 = arith.constant 3.200000e+01 : f32
    %41 = vector.broadcast %cst_18 : f32 to vector<4x1xf32>
    %42 = arith.divf %40, %41 : vector<4x1xf32>
    %43 = vector.broadcast %35 : vector<4x1xf32> to vector<4x32xf32>
    %44 = arith.subf %31, %43 : vector<4x32xf32>
    %cst_19 = arith.constant 9.99999974E-6 : f32
    %45 = vector.broadcast %cst_19 : f32 to vector<4x1xf32>
    %46 = arith.addf %42, %45 : vector<4x1xf32>
    %47 = math.rsqrt %46 : vector<4x1xf32>
    %48 = vector.broadcast %47 : vector<4x1xf32> to vector<4x32xf32>
    %49 = arith.mulf %44, %48 : vector<4x32xf32>
    %c0_20 = arith.constant 0 : index
    %c0_21 = arith.constant 0 : index
    %50 = vector.load %arg6[%c0_20, %c0_21] : memref<1x32xf32, #tpu.memory_space<vmem>>, vector<1x32xf32>
    %51 = vector.broadcast %50 : vector<1x32xf32> to vector<4x32xf32>
    %52 = arith.mulf %49, %51 : vector<4x32xf32>
    %c0_22 = arith.constant 0 : index
    %c0_23 = arith.constant 0 : index
    %53 = vector.load %arg7[%c0_22, %c0_23] : memref<1x32xf32, #tpu.memory_space<vmem>>, vector<1x32xf32>
    %54 = vector.broadcast %53 : vector<1x32xf32> to vector<4x32xf32>
    %55 = arith.addf %52, %54 : vector<4x32xf32>
    %c0_24 = arith.constant 0 : index
    %c0_25 = arith.constant 0 : index
    %56 = vector.load %arg8[%c0_24, %c0_25] : memref<4x32xf32, #tpu.memory_space<vmem>>, vector<4x32xf32>
    %57 = arith.addf %55, %56 : vector<4x32xf32>
    %c0_26 = arith.constant 0 : index
    %c0_27 = arith.constant 0 : index
    %c0_28 = arith.constant 0 : index
    %58 = vector.load %arg9[%c0_26, %c0_27, %c0_28] : memref<1x4x32xf32, #tpu.memory_space<vmem>>, vector<1x4x32xf32>
    %59 = vector.shape_cast %58 : vector<1x4x32xf32> to vector<4x32xf32>
    %60 = vector.shape_cast %57 : vector<4x32xf32> to vector<1x4x32xf32>
    tpu.vector_store %arg9[%c0_26, %c0_27, %c0_28], %60 {strides = array<i32>} : memref<1x4x32xf32, #tpu.memory_space<vmem>>, vector<1x4x32xf32>,
    return
  }
  func.func @transform_0(%arg0: i32) -> (i32, i32, i32) {
    %c0_i32 = arith.constant 0 : i32
    %c0_i32_0 = arith.constant 0 : i32
    %c0_i32_1 = arith.constant 0 : i32
    return %arg0, %c0_i32, %c0_i32_0 : i32, i32, i32
  }
  func.func @transform_1(%arg0: i32) -> (i32, i32) {
    %c0_i32 = arith.constant 0 : i32
    %c0_i32_0 = arith.constant 0 : i32
    %c0_i32_1 = arith.constant 0 : i32
    return %c0_i32, %c0_i32_0 : i32, i32
  }
  func.func @transform_2(%arg0: i32) -> (i32, i32) {
    %c0_i32 = arith.constant 0 : i32
    %c0_i32_0 = arith.constant 0 : i32
    %c0_i32_1 = arith.constant 0 : i32
    return %c0_i32, %c0_i32_0 : i32, i32
  }
  func.func @transform_3(%arg0: i32) -> (i32, i32) {
    %c0_i32 = arith.constant 0 : i32
    %c0_i32_0 = arith.constant 0 : i32
    %c0_i32_1 = arith.constant 0 : i32
    return %c0_i32, %c0_i32_0 : i32, i32
  }
  func.func @transform_4(%arg0: i32) -> (i32, i32) {
    %c0_i32 = arith.constant 0 : i32
    %c0_i32_0 = arith.constant 0 : i32
    %c0_i32_1 = arith.constant 0 : i32
    return %c0_i32, %c0_i32_0 : i32, i32
  }
  func.func @transform_5(%arg0: i32) -> (i32, i32) {
    %c0_i32 = arith.constant 0 : i32
    %c0_i32_0 = arith.constant 0 : i32
    %c0_i32_1 = arith.constant 0 : i32
    return %c0_i32, %c0_i32_0 : i32, i32
  }
  func.func @transform_6(%arg0: i32) -> (i32, i32) {
    %c0_i32 = arith.constant 0 : i32
    %c0_i32_0 = arith.constant 0 : i32
    %c0_i32_1 = arith.constant 0 : i32
    return %c0_i32, %c0_i32_0 : i32, i32
  }
  func.func @transform_7(%arg0: i32) -> (i32, i32) {
    %c0_i32 = arith.constant 0 : i32
    %c0_i32_0 = arith.constant 0 : i32
    %c0_i32_1 = arith.constant 0 : i32
    return %c0_i32, %c0_i32_0 : i32, i32
  }
  func.func @transform_8(%arg0: i32) -> (i32, i32, i32) {
    %c0_i32 = arith.constant 0 : i32
    %c0_i32_0 = arith.constant 0 : i32
    %c0_i32_1 = arith.constant 0 : i32
    return %arg0, %c0_i32, %c0_i32_0 : i32, i32, i32
  }
}

</mosaic_0001>

<bundles_post_ra>
// kernel: tpu_custom_call.1
= control target key start
LH: loop header
LB: loop body
LE: loop exit
PB: predicated region body
PF: predicated region fallthrough
CT: control target
= control target key end

     0   :  { %13 = vsyncpa [#allocation3], 0  ;;  %s994_s0 = inlined_call_operand.vmem [shape: f32[2,4,192], index: 0, kind: input, shape index: {}]   ;;  %s995_s1 = inlined_call_operand.vmem [shape: f32[1,192], index: 1, kind: input, shape index: {}]   ;;  %s996_s2 = inlined_call_operand.vmem [shape: f32[1,192], index: 2, kind: input, shape index: {}]   ;;  %s997_s3 = inlined_call_operand.vmem [shape: bf16[192,32], index: 3, kind: input, shape index: {}]   ;;  %s998_s4 = inlined_call_operand.vmem [shape: f32[1,32], index: 4, kind: input, shape index: {}]   ;;  %s999_s5 = inlined_call_operand.vmem [shape: f32[1,32], index: 5, kind: input, shape index: {}]   ;;  %s1000_s6 = inlined_call_operand.vmem [shape: f32[1,32], index: 6, kind: input, shape index: {}]   ;;  %s1001_s7 = inlined_call_operand.vmem [shape: f32[4,32], index: 7, kind: input, shape index: {}]   ;;  %s1002_s8 = inlined_call_operand.hbm [shape: f32[2,4,32], index: 8, kind: output, shape index: {}]  }
   0x1   :  { %15 = vsyncpa [#allocation3 + $0x1], 0  ;;  %s833_s27 = smov 0   ;;  %s835_s28 = smov 0  }
   0x2   :  { %s837_s29 = smov 0   ;;  %s839_s30 = smov 0  }
   0x3 LB: > { %s854_s9 = sadd.s32 4294967295, %s783_s30   ;;  %s635_s10 = sadd.s32 4294967294, %s783_s30   ;;  %s783_s30 = sphi %s839_s30, %s1008_s30   ;;  %s779_s29 = sphi %s837_s29, %s1007_s29   ;;  %s775_s28 = sphi %s835_s28, %s1006_s28   ;;  %s771_s27 = sphi %s833_s27, %s1005_s27  }
   0x4   : > { %s858_s11 = sadd.s32 1, %s783_s30   ;;  %s201_s12 = sadd.s32 1, %s779_s29 }
   0x5   : > { %s198_s13 = ssub.s32 %s783_s30, %s858_s11  ;;  %p211_p0 = scmp.ne.s32.totalorder %s779_s29, %s775_s28 }
   0x6   : > { %p199_p1 = scmp.eq.s32.totalorder %s198_s13, 0  ;;  %p212_p2 = scmp.eq.s32.totalorder %s854_s9, 1 }
   0x7   : > { %p217_p3 = scmp.ne.s32.totalorder %s775_s28, %s771_s27  ;;  %p218_p4 = scmp.eq.s32.totalorder %s635_s10, 1 }
   0x8   : > { %s869_s14 = scalar_select %p199_p1, %s779_s29, %s201_s12  }
   0x9   : > { %p871_p5 = por %p212_p2, %p211_p0  ;;  %p875_p6 = por %p218_p4, %p217_p3 }
   0xa   : > { %p638_p7 = scmp.ge.s32.totalorder %s783_s30, 1  ;;  %p265_p8 = scmp.lt.s32.totalorder %s783_s30, 3 }
   0xc   : > { %p266_p9 = pnand %p638_p7, %p265_p8 }
   0xd   : > { %p299_p10 = scmp.lt.s32.totalorder (!%p266_p9), %s854_s9, 1  ;;  %vm309_vm0 = vcmask (!%p266_p9), 1043456   ;;  %vm311_vm1 = vcmask (!%p266_p9), 519168   ;;  %v705_v5 = vld [vmem:[%s997_s3] sm:$0xff] (!%p266_p9)   ;;  %v785_v6 = vmov (!%p266_p9), 0   ;;  %v706_v7 = vld [vmem:[%s997_s3 + $0x8] sm:$0xff] (!%p266_p9)   ;;  %v322_v13 = vlaneseq (!%p266_p9) }
   0xe   : > { %269 = sbr.rel (%p266_p9) target bundleno = 899 (0x383), region = 52  ;;  %488 = vmatprep.subr.bf16.mxu0 (!%p266_p9), %v785_v6  ;;  %v707_v8 = vld [vmem:[%s997_s3 + $0x10] sm:$0xff] (!%p266_p9)   ;;  %v708_v9 = vld [vmem:[%s997_s3 + $0x18] sm:$0xff] (!%p266_p9)   ;;  %v709_v10 = vld [vmem:[%s997_s3 + $0x20] sm:$0xff] (!%p266_p9)   ;;  %v786_v11 = vmov (!%p266_p9), 839922192  }
   0xf   : > { %489 = vmatpush1.bf16.msra.mxu0 (!%p266_p9), %v705_v5  ;;  %v320_v12 = vunpack.c.l.s4 (!%p266_p9), %v786_v11  ;;  %v323_v15 = vshrl.u32 (!%p266_p9), %v322_v13, 7  ;;  %v710_v26 = vld [vmem:[%s997_s3 + $0x28] sm:$0xff] (!%p266_p9)   ;;  %v711_v27 = vld [vmem:[%s997_s3 + $0x30] sm:$0xff] (!%p266_p9)   ;;  %v712_v28 = vld [vmem:[%s997_s3 + $0x38] sm:$0xff] (!%p266_p9)   ;;  %vm484_vm2 = vcmask (!%p266_p9), 523264   ;;  %vm528_vm3 = vcmask (!%p266_p9), 257024  }
  0x10   : > { %490 = vmatprep.subr.bf16.mxu0 (!%p266_p9), %v785_v6  ;;  %v713_v29 = vld [vmem:[%s997_s3 + $0x40] sm:$0xff] (!%p266_p9)   ;;  %v714_v30 = vld [vmem:[%s997_s3 + $0x48] sm:$0xff] (!%p266_p9)   ;;  %v715_v31 = vld [vmem:[%s997_s3 + $0x50] sm:$0xff] (!%p266_p9)   ;;  %s296_s26 = sand.u32 (!%p266_p9), 1, %s775_s28  }
  0x11   : > { %v321_v14 = vunpack.c.0.s8 (!%p266_p9), %v320_v12  ;;  %v716_v32 = vld [vmem:[%s997_s3 + $0x58] sm:$0xff] (!%p266_p9)   ;;  %v354_v36 = vsub.s32 (!%p266_p9), 0, %v323_v15  ;;  %v358_v37 = vsub.s32 (!%p266_p9), 1, %v323_v15  ;;  %v350_v38 = vld [vmem:[%s995_s1] sm:$0x3] (!%p266_p9)  ;;  %s639_s10 = sshll.u32 (!%p266_p9), %s296_s26, 2 }
  0x12   : > { %v363_v39 = vld [vmem:[%s996_s2] sm:$0x3] (!%p266_p9)  ;;  %s298_s22 = scalar_lea.vmem (!%p266_p9), [#allocation2], %s639_s10  ;;  %s563_s13 = scalar_lea.sflag (!%p266_p9), [#allocation3], %s296_s26 }
  0x13   : > { %491 = vmatpush1.bf16.msra.mxu0 (!%p266_p9), %v706_v7  ;;  %v324_v16 = vsub.s32 (!%p266_p9), %v321_v14, %v323_v15  ;;  %v355_v40 = vrot.slane (!%p266_p9), %v350_v38, %v354_v36  ;;  %v359_v41 = vrot.slane (!%p266_p9), %v350_v38, %v358_v37  ;;  %v368_v42 = vrot.slane (!%p266_p9), %v363_v39, %v354_v36  ;;  %v642_v54 = vld [vmem:[%s998_s4] ss:$0 sm:$0xff] (!%p266_p9)  ;;  %s576_s23 = sshll.u32 (!%p266_p9), %s298_s22, 4  ;;  %s953_s23 = int_to_ptr.vmem [resolvable:$true] %s576_s23 }
  0x14   : > { %492 = vmatprep.subr.bf16.mxu0 (!%p266_p9), %v785_v6  ;;  %v372_v43 = vrot.slane (!%p266_p9), %v363_v39, %v358_v37 }
  0x15   : > { %s300_s17 = scalar_select %p299_p10, %s854_s9, 1  ;;  %v360_v46 = vcombine.low %v355_v40, %v359_v41 }
  0x16   : > { %v373_v48 = vcombine.low %v368_v42, %v372_v43 }
  0x17   : > { %s662_s18 = sshll.u32 %s300_s17, 3  ;;  %493 = vmatpush1.bf16.msra.mxu0 %v707_v8  ;;  %v657_v8 = vld [vmem:[%s1000_s6] ss:$0 sm:$0xff]  ;;  %s721_s17 = scalar_lea.vmem %s953_s23, 64 }
  0x18   : > { %s303_s21 = scalar_lea.vmem %s994_s0, %s662_s18  ;;  %494 = vmatprep.subr.bf16.mxu0 %v785_v6  ;;  %p722_p11 = scmp.ne.s32.totalorder %s953_s23, %s721_s17 }
  0x19   : > { %v305_v0 = vld [vmem:[%s303_s21] sm:$0xff]  ;;  %s659_s21 = sshll.u32 %s854_s9, 6  ;;  %s787_s9 = smov [#allocation2]  }
  0x1a   : > { %v307_v1 = vcombine.high %v305_v0, %v305_v0  ;;  %v310_v2 = vsel %vm309_vm0, %v305_v0, 0.0  ;;  %s951_s12 = scalar_lea.hbm %s1002_s8, %s659_s21  ;;  %p723_p12 = pnand %p722_p11, %p871_p5 }
  0x1b   : > { %495 = vmatpush1.bf16.msra.mxu0 %v708_v9  ;;  %s725_s10 = sshll.u32 %s787_s9, 4  ;;  %s726_s10 = int_to_ptr.vmem [resolvable:$false] %s725_s10 }
  0x1c   : > { %v312_v3 = vsel %vm311_vm1, %v307_v1, 0.0  ;;  %496 = vmatprep.subr.bf16.mxu0 %v785_v6  ;;  %p724_p13 = pneg %p723_p12  ;;  %s727_s18 = scalar_lea.vmem %s726_s10, 128 }
  0x1d   : > { %v313_v4 = vadd.f32 %v312_v3, %v310_v2  ;;  %p728_p0 = scmp.lt.s32.totalorder %s953_s23, %s726_s10  ;;  %p729_p1 = scmp.lt.s32.totalorder %s727_s18, %s721_s17 }
  0x1f   : > { %314 = vadd.xlane.f32.xlu0 %v313_v4  ;;  %497 = vmatpush1.bf16.msra.mxu0 %v709_v10  ;;  %v559_v10 = vld [vmem:[%s1001_s7] sm:$0xf]  ;;  %p730_p2 = por %p729_p1, %p728_p0 }
  0x20   : > { %498 = vmatprep.subr.bf16.mxu0 %v785_v6 }
  0x21   : > { %p731_p3 = pnand %p730_p2, %p724_p13 }
  0x23   : > { %499 = vmatpush1.bf16.msra.mxu0 %v710_v26 }
  0x24   : > { %500 = vmatprep.subr.bf16.mxu0 %v785_v6 }
  0x27   : > { %501 = vmatpush1.bf16.msra.mxu0 %v711_v27 }
  0x28   : > { %502 = vmatprep.subr.bf16.mxu0 %v785_v6 }
  0x2b   : > { %503 = vmatpush1.bf16.msra.mxu0 %v712_v28 }
  0x2c   : > { %504 = vmatprep.subr.bf16.mxu0 %v785_v6 }
  0x2f   : > { %505 = vmatpush1.bf16.msra.mxu0 %v713_v29 }
  0x30   : > { %506 = vmatprep.subr.bf16.mxu0 %v785_v6 }
  0x33   : > { %507 = vmatpush1.bf16.msra.mxu0 %v714_v30 }
  0x34   : > { %508 = vmatprep.subr.bf16.mxu0 %v785_v6 }
  0x37   : > { %509 = vmatpush1.bf16.msra.mxu0 %v715_v31 }
  0x38   : > { %510 = vmatprep.subr.bf16.mxu0 %v785_v6  ;;  %v656_v6 = vld [vmem:[%s999_s5] ss:$0 sm:$0xff] }
  0x3b   : > { %511 = vmatpush1.bf16.msra.mxu0 %v716_v32 }
  0xac   : > { %v315_v17 = vpop.xlane.xlu0 %314 }
  0xad   : > { %v317_v18 = vmul.f32 0.0052083335, %v315_v17 }
  0xaf   : > { %v325_v19 = vrot.slane %v317_v18, %v324_v16 }
  0xb1   : > { %v327_v20 = vsub.f32 %v305_v0, %v325_v19 }
  0xb3   : > { %v328_v21 = vmul.f32 %v327_v20, %v327_v20 }
  0xb5   : > { %v330_v22 = vcombine.high %v328_v21, %v328_v21  ;;  %v332_v23 = vsel %vm309_vm0, %v328_v21, 0.0 }
  0xb7   : > { %v333_v24 = vsel %vm311_vm1, %v330_v22, 0.0 }
  0xb8   : > { %v334_v25 = vadd.f32 %v333_v24, %v332_v23 }
  0xba   : > { %335 = vadd.xlane.f32.xlu0 %v334_v25 }
 0x147   : > { %v336_v33 = vpop.xlane.xlu0 %335 }
 0x148   : > { %v337_v34 = vmul.f32 0.0052083335, %v336_v33 }
 0x14a   : > { %v338_v35 = vadd.f32 1e-05, %v337_v34 }
 0x14c   : > { %717 = vrsqrt.f32 %v338_v35 }
 0x156   : > { %v718_v44 = vpop.eup %717 }
 0x157   : > { %v347_v45 = vrot.slane %v718_v44, %v324_v16 }
 0x159   : > { %v349_v47 = vmul.f32 %v347_v45, %v327_v20 }
 0x15b   : > { %v362_v49 = vmul.f32 %v360_v46, %v349_v47 }
 0x15d   : > { %v375_v50 = vadd.f32 %v373_v48, %v362_v49 }
 0x15f   : > { %v377_v51 = vcombine.high %v375_v50, %v375_v50  ;;  %v379_v53 = vpack.c.bf16 %v375_v50, %v375_v50 }
 0x161   : > { %v380_v52 = vpack.c.bf16 %v377_v51, %v377_v51 }
 0x163   : > { %655 = vmatprep.mubr.msk.bf16.mxu0 %vm484_vm2, %v380_v52 }
 0x164   : > { %521 = vmatmul.mubr.bf16.vlgmr.msra.gmra.mrb[0].mxu0 %v379_v53 }
 0x237   : > { %v522_v55 = vpop.f32.mrb[0].mxu0 }
 0x238   : > { %v523_v56 = vadd.f32 %v642_v54, %v522_v55  ;;  %v524_v57 = vpop.f32.mrb[1].mxu0 }
 0x239   : > { %v525_v58 = vpop.f32.mrb[2].mxu0 }
 0x23a   : > { %v526_v59 = vpop.f32.mrb[3].mxu0  ;;  %v529_v60 = vsel %vm528_vm3, %v523_v56, 0.0 }
 0x23b   : > { %530 = vadd.xlane.f32.xlu1 %v529_v60 }
 0x2c8   : > { %v531_v61 = vpop.xlane.xlu1 %530 }
 0x2c9   : > { %v533_v62 = vmul.f32 0.03125, %v531_v61 }
 0x2cb   : > { %v534_v63 = vsub.f32 %v523_v56, %v533_v62 }
 0x2cd   : > { %v535_v0 = vmul.f32 %v534_v63, %v534_v63 }
 0x2cf   : > { %v536_v1 = vsel %vm528_vm3, %v535_v0, 0.0 }
 0x2d0   : > { %537 = vadd.xlane.f32.xlu1 %v536_v1 }
 0x35d   : > { %v538_v2 = vpop.xlane.xlu1 %537 }
 0x35e   : > { %v539_v3 = vmul.f32 0.03125, %v538_v2 }
 0x360   : > { %v540_v4 = vadd.f32 1e-05, %v539_v3 }
 0x362   : > { %719 = vrsqrt.f32 %v540_v4 }
 0x36c   : > { %v720_v5 = vpop.eup %719 }
 0x36d   : > { %v542_v7 = vmul.f32 %v720_v5, %v534_v63 }
 0x36f   : > { %v550_v9 = vmul.f32 %v656_v6, %v542_v7 }
 0x371   : > { %v558_v11 = vadd.f32 %v657_v8, %v550_v9 }
 0x373   : > { %v560_v12 = vadd.f32 %v559_v10, %v558_v11 }
 0x375   : > { %561 = vst.msk [vmem:[%s298_s22] sm:$0xf] %vm528_vm3, %v560_v12 }
 0x376   : > { %734 = shalt.err (!%p731_p3)
}
 0x377   : > { %s735_s26 = scalar_lea.hbm %s951_s12, 64  ;;  %s739_s21 = scalar_lea.hbm %s1002_s8, 128 }
 0x378   : > { %p736_p4 = scmp.ne.s32.totalorder %s951_s12, %s735_s26  ;;  %p740_p9 = scmp.lt.u32.totalorder %s951_s12, %s1002_s8 }
 0x379   : > { %p741_p10 = scmp.lt.u32.totalorder %s739_s21, %s735_s26  ;;  %p743_p12 = scmp.lt.u32.totalorder %s735_s26, %s951_s12 }
 0x37a   : > { %p737_p7 = pnand %p736_p4, %p871_p5 }
 0x37b   : > { %p742_p11 = por %p741_p10, %p740_p9 }
 0x37c   : > { %p738_p8 = pneg %p737_p7 }
 0x37d   : > { %p744_p13 = por %p743_p12, %p742_p11 }
 0x37f   : > { %p745_p0 = pnand %p744_p13, %p738_p8 }
 0x381   : > { %748 = shalt.err (!%p745_p0)
}
 0x382   : > { %663 = dma.vmem_to_hbm [thread:$0]  (%p871_p5), %s953_s23, 64, %s951_s12, %s563_s13  }
 0x383 PF: > { %p669_p1 = scmp.ge.s32.totalorder %s783_s30, 2  ;;  %s588_s25 = sand.u32 1, %s771_s27  }
 0x384   : > { %s589_s17 = scalar_lea.sflag [#allocation3], %s588_s25 }
 0x385   : > { %p666_p2 = pnand %p669_p1, %p875_p6 }
 0x387   : > { %766 = dma.done.wait (!%p666_p2), %s589_s17, 64  }
 0x388   : > { %768 = vsyncadd (!%p666_p2), %s589_s17, 4294967232  ;;  %p18_p3 = scmp.ge.s32.totalorder %s858_s11, 4   ;;  %s1005_s27 = smov %s775_s28 }
 0x389   : > { %s1006_s28 = smov %s779_s29  ;;  %s1007_s29 = smov %s869_s14 }
 0x38a   : > { %s1008_s30 = smov %s858_s11  ;;  %20 = sbr.rel (!%p18_p3) target bundleno = 3 (0x3), region = 87 }
 0x391   :  { %594 = vsyncpa [#allocation3], 1 }
 0x392   :  { %596 = vsyncpa [#allocation3 + $0x1], 1 }

</bundles_post_ra>
